<compile_context>
chip_gen: v6e
topology: v6e:2x2x1
jax: 0.10.0
libtpu: 0.0.40
codegen_flags: <defaults>
</compile_context>

<pallas_src>
import functools

import jax
import jax.numpy as jnp
from jax.experimental import pallas as pl
from jax.experimental.pallas import tpu as pltpu


def _round_up(n, m):
    return ((n + m - 1) // m) * m


def _mlp_kernel(x_ref, w1_ref, b1_ref, w2_ref, b2_ref, w3_ref, b3_ref, o_ref):
    # Layer 1: Linear(item_input_size -> 256) + ReLU (MXU matmul, f32 accumulation).
    h1 = jnp.dot(x_ref[...], w1_ref[...], preferred_element_type=jnp.float32)
    h1 = jnp.maximum(h1 + b1_ref[...], 0.0)
    # Layer 2: Linear(256 -> 128) + ReLU.
    h2 = jnp.dot(h1.astype(w2_ref.dtype), w2_ref[...], preferred_element_type=jnp.float32)
    h2 = jnp.maximum(h2 + b2_ref[...], 0.0)
    # Dropout(p): identity at inference time.
    # TODO(synk): add training-mode dropout via pltpu.prng_seed/prng_random_bits if needed.
    # Layer 3: Linear(128 -> emb_pad); emb lane-padded to a multiple of 128 -> dense stores.
    o = jnp.dot(h2.astype(w3_ref.dtype), w3_ref[...], preferred_element_type=jnp.float32)
    o_ref[...] = (o + b3_ref[...]).astype(o_ref.dtype)


def _resident_spec(shape):
    """BlockSpec for a loop-invariant (VMEM-resident) operand: constant block index,
    single-buffered when the installed Pallas supports pipeline_mode."""
    index_map = lambda i: (0, 0)
    if hasattr(pl, "Buffered"):
        try:
            return pl.BlockSpec(shape, index_map, pipeline_mode=pl.Buffered(1))
        except TypeError:
            pass
    return pl.BlockSpec(shape, index_map)


def prepare_params(params, compute_dtype=jnp.bfloat16):
    """One-time weight preparation (hoisted out of the per-call hot path).

    - Lane-pads the output projection (w3/b3) to a multiple of 128 for dense stores.
    - Casts weight matrices to the streaming/compute dtype (biases stay f32).
    params: dict with w1 (in,256), b1 (1,256), w2 (256,128), b2 (1,128),
            w3 (128,emb), b3 (1,emb)   [weights = PyTorch weights transposed]
    """
    emb = params["w3"].shape[1]
    emb_pad = _round_up(emb, 128)
    w3, b3 = params["w3"], params["b3"]
    if emb_pad != emb:
        w3 = jnp.pad(w3, ((0, 0), (0, emb_pad - emb)))
        b3 = jnp.pad(b3, ((0, 0), (0, emb_pad - emb)))
    return {
        "w1": params["w1"].astype(compute_dtype),
        "b1": params["b1"].astype(jnp.float32),
        "w2": params["w2"].astype(compute_dtype),
        "b2": params["b2"].astype(jnp.float32),
        "w3": w3.astype(compute_dtype),
        "b3": b3.astype(jnp.float32),
    }


@functools.partial(jax.jit, static_argnames=("embedding_size", "block_b"))
def item_tower_v2_forward(x, prepared, *, embedding_size, block_b=1024):
    """Fused forward of ItemTowerV2.

    x:         (B, item_input_size)
    prepared:  output of prepare_params()
    returns:   (B, embedding_size) in the streaming/compute dtype (bf16 by default).
    """
    B, in_f = x.shape
    w1, b1 = prepared["w1"], prepared["b1"]
    w2, b2 = prepared["w2"], prepared["b2"]
    w3, b3 = prepared["w3"], prepared["b3"]
    compute_dtype = w1.dtype
    emb_pad = w3.shape[1]
    out_dtype = compute_dtype  # narrow writeback; caller upcasts if needed

    dt = jnp.dtype(compute_dtype).itemsize
    odt = jnp.dtype(out_dtype).itemsize
    sublane = 16 if dt < 4 else 8

    # Pad the batch only to the sublane multiple (NOT to block_b); the grid uses a
    # cdiv partial tail block so no extra full-tile padding pass is needed.
    B_pad = _round_up(B, sublane)
    block_b = max(sublane, _round_up(min(block_b, B_pad), sublane))
    if B_pad != B:
        x = jnp.pad(x, ((0, B_pad - B), (0, 0)))
    xc = x.astype(compute_dtype)

    grid = (pl.cdiv(B_pad, block_b),)

    # VMEM footprint: double-buffered x/out tiles, single-buffered resident weights,
    # plus f32 intermediates. Cap at ~55% of this generation's per-core VMEM capacity.
    weight_bytes = (in_f * 256 + 256 * 128 + 128 * emb_pad) * dt + (256 + 128 + emb_pad) * 4
    est = (2 * block_b * in_f * dt
           + 2 * block_b * emb_pad * odt
           + weight_bytes
           + block_b * (256 + 128 + emb_pad) * 4)
    try:
        vmem_cap = int(pltpu.get_tpu_info().vmem_capacity_bytes)
    except Exception:
        vmem_cap = 64 * 1024 * 1024  # conservative (v7x per-TC)
    vmem_limit = int(min(int(0.55 * vmem_cap), max(8 * 1024 * 1024, 2 * est)))

    flops = 2 * B_pad * (in_f * 256 + 256 * 128 + 128 * emb_pad)
    bytes_accessed = B_pad * in_f * dt + B_pad * emb_pad * odt + weight_bytes
    cost = pl.CostEstimate(flops=flops, transcendentals=0, bytes_accessed=bytes_accessed)

    in_specs = [
        # x: one batch tile per grid step (streamed / double-buffered by Pallas).
        pl.BlockSpec((block_b, in_f), lambda i: (i, 0)),
        # Weights/biases: loop-invariant, VMEM-resident, single-buffered.
        _resident_spec(w1.shape),
        _resident_spec(b1.shape),
        _resident_spec(w2.shape),
        _resident_spec(b2.shape),
        _resident_spec(w3.shape),
        _resident_spec(b3.shape),
    ]
    out_specs = pl.BlockSpec((block_b, emb_pad), lambda i: (i, 0))

    out = pl.pallas_call(
        _mlp_kernel,
        out_shape=jax.ShapeDtypeStruct((B_pad, emb_pad), out_dtype),
        grid_spec=pltpu.PrefetchScalarGridSpec(
            num_scalar_prefetch=0,
            grid=grid,
            in_specs=in_specs,
            out_specs=out_specs,
        ),
        compiler_params=pltpu.CompilerParams(
            dimension_semantics=("parallel",),
            vmem_limit_bytes=vmem_limit,
        ),
        cost_estimate=cost,
    )(xc, w1, b1, w2, b2, w3, b3)

    return out[:B, :embedding_size]


def init_params(key, item_input_size, embedding_size):
    """nn.Linear-style init: U(-1/sqrt(fan_in), 1/sqrt(fan_in)); weights stored (in, out)."""
    dims = [(item_input_size, 256), (256, 128), (128, embedding_size)]
    params = {}
    for idx, (fan_in, fan_out) in enumerate(dims, start=1):
        key, kw, kb = jax.random.split(key, 3)
        bound = 1.0 / jnp.sqrt(jnp.float32(fan_in))
        params[f"w{idx}"] = jax.random.uniform(
            kw, (fan_in, fan_out), jnp.float32, minval=-bound, maxval=bound)
        params[f"b{idx}"] = jax.random.uniform(
            kb, (1, fan_out), jnp.float32, minval=-bound, maxval=bound)
    return params


def reference_forward(x, params):
    h1 = jnp.maximum(x @ params["w1"] + params["b1"], 0.0)
    h2 = jnp.maximum(h1 @ params["w2"] + params["b2"], 0.0)
    return h2 @ params["w3"] + params["b3"]


if __name__ == "__main__":
    item_input_size = 32
    embedding_size = 32
    batch = 12            # not a multiple of 8/16 -> exercises sublane tail padding
    dropout_rate = 0.1    # inference-mode => identity

    key = jax.random.PRNGKey(0)
    key, kx = jax.random.split(key)
    x = jax.random.normal(kx, (batch, item_input_size), jnp.float32)
    params = init_params(key, item_input_size, embedding_size)
    ref = reference_forward(x, params)

    # --- f32 streaming path: tight check vs reference ---
    prep_f32 = prepare_params(params, compute_dtype=jnp.float32)
    out_f32 = jax.block_until_ready(
        item_tower_v2_forward(x, prep_f32, embedding_size=embedding_size))
    assert out_f32.shape == (batch, embedding_size), out_f32.shape
    assert jnp.allclose(out_f32, ref, atol=1e-4, rtol=1e-4), \
        float(jnp.max(jnp.abs(out_f32 - ref)))

    # --- bf16 default streaming path (f32 MXU accumulation) -> loose tolerance ---
    prep_bf16 = prepare_params(params)  # default bf16
    out_bf16 = jax.block_until_ready(
        item_tower_v2_forward(x, prep_bf16, embedding_size=embedding_size))
    assert out_bf16.shape == (batch, embedding_size), out_bf16.shape
    assert jnp.allclose(out_bf16.astype(jnp.float32), ref, atol=0.15, rtol=0.15), \
        float(jnp.max(jnp.abs(out_bf16.astype(jnp.float32) - ref)))

    # --- multi-step grid with a partial (cdiv) tail block ---
    key, kx2 = jax.random.split(key)
    x_big = jax.random.normal(kx2, (200, item_input_size), jnp.float32)
    ref_big = reference_forward(x_big, params)
    out_big = jax.block_until_ready(
        item_tower_v2_forward(x_big, prep_f32, embedding_size=embedding_size, block_b=64))
    assert out_big.shape == (200, embedding_size), out_big.shape
    assert jnp.allclose(out_big, ref_big, atol=1e-4, rtol=1e-4), \
        float(jnp.max(jnp.abs(out_big - ref_big)))

    print("KERNEL_OK")
</pallas_src>

<mosaic_0001>
module attributes {stable_mosaic.version = 11 : i64} {
  func.func @_mlp_kernel(%arg0: i32, %arg1: memref<16x32xf32, #tpu.memory_space<vmem>>, %arg2: memref<32x256xf32, #tpu.memory_space<vmem>>, %arg3: memref<1x256xf32, #tpu.memory_space<vmem>>, %arg4: memref<256x128xf32, #tpu.memory_space<vmem>>, %arg5: memref<1x128xf32, #tpu.memory_space<vmem>>, %arg6: memref<128x128xf32, #tpu.memory_space<vmem>>, %arg7: memref<1x128xf32, #tpu.memory_space<vmem>>, %arg8: memref<16x128xf32, #tpu.memory_space<vmem>>) attributes {dimension_semantics = [#tpu.dimension_semantics<parallel>], iteration_bounds = array<i64: 1>, scalar_prefetch = 0 : i64, scratch_operands = 0 : i64, tpu.core_type = #tpu.core_type<tc>, window_params = [{transform_indices = @transform_0, window_bounds = array<i64: 16, 32>}, {pipeline_mode = #tpu.pipeline_mode<synchronous>, transform_indices = @transform_1, window_bounds = array<i64: 32, 256>}, {pipeline_mode = #tpu.pipeline_mode<synchronous>, transform_indices = @transform_2, window_bounds = array<i64: 1, 256>}, {pipeline_mode = #tpu.pipeline_mode<synchronous>, transform_indices = @transform_3, window_bounds = array<i64: 256, 128>}, {pipeline_mode = #tpu.pipeline_mode<synchronous>, transform_indices = @transform_4, window_bounds = array<i64: 1, 128>}, {pipeline_mode = #tpu.pipeline_mode<synchronous>, transform_indices = @transform_5, window_bounds = array<i64: 128, 128>}, {pipeline_mode = #tpu.pipeline_mode<synchronous>, transform_indices = @transform_6, window_bounds = array<i64: 1, 128>}, {transform_indices = @transform_7, window_bounds = array<i64: 16, 128>}]} {
    %c0 = arith.constant 0 : index
    %c0_0 = arith.constant 0 : index
    %0 = vector.load %arg1[%c0, %c0_0] : memref<16x32xf32, #tpu.memory_space<vmem>>, vector<16x32xf32>
    %c0_1 = arith.constant 0 : index
    %c0_2 = arith.constant 0 : index
    %1 = vector.load %arg2[%c0_1, %c0_2] : memref<32x256xf32, #tpu.memory_space<vmem>>, vector<32x256xf32>
    %cst = arith.constant dense<0.000000e+00> : vector<16x256xf32>
    %2 = tpu.matmul %0, %1, %cst {dimension_numbers = #tpu.dot_dimension_numbers<[1], [0], [0], [1], [0, 0, 1, 1], [], []>} : vector<16x32xf32>, vector<32x256xf32>, vector<16x256xf32> -> vector<16x256xf32>
    %c0_3 = arith.constant 0 : index
    %c0_4 = arith.constant 0 : index
    %3 = vector.load %arg3[%c0_3, %c0_4] : memref<1x256xf32, #tpu.memory_space<vmem>>, vector<1x256xf32>
    %4 = vector.broadcast %3 : vector<1x256xf32> to vector<16x256xf32>
    %5 = arith.addf %2, %4 : vector<16x256xf32>
    %cst_5 = arith.constant 0.000000e+00 : f32
    %6 = vector.broadcast %cst_5 : f32 to vector<16x256xf32>
    %7 = arith.maximumf %5, %6 : vector<16x256xf32>
    %c0_6 = arith.constant 0 : index
    %c0_7 = arith.constant 0 : index
    %8 = vector.load %arg4[%c0_6, %c0_7] : memref<256x128xf32, #tpu.memory_space<vmem>>, vector<256x128xf32>
    %cst_8 = arith.constant dense<0.000000e+00> : vector<16x128xf32>
    %9 = tpu.matmul %7, %8, %cst_8 {dimension_numbers = #tpu.dot_dimension_numbers<[1], [0], [0], [1], [0, 0, 1, 1], [], []>} : vector<16x256xf32>, vector<256x128xf32>, vector<16x128xf32> -> vector<16x128xf32>
    %c0_9 = arith.constant 0 : index
    %c0_10 = arith.constant 0 : index
    %10 = vector.load %arg5[%c0_9, %c0_10] : memref<1x128xf32, #tpu.memory_space<vmem>>, vector<1x128xf32>
    %11 = vector.broadcast %10 : vector<1x128xf32> to vector<16x128xf32>
    %12 = arith.addf %9, %11 : vector<16x128xf32>
    %cst_11 = arith.constant 0.000000e+00 : f32
    %13 = vector.broadcast %cst_11 : f32 to vector<16x128xf32>
    %14 = arith.maximumf %12, %13 : vector<16x128xf32>
    %c0_12 = arith.constant 0 : index
    %c0_13 = arith.constant 0 : index
    %15 = vector.load %arg6[%c0_12, %c0_13] : memref<128x128xf32, #tpu.memory_space<vmem>>, vector<128x128xf32>
    %cst_14 = arith.constant dense<0.000000e+00> : vector<16x128xf32>
    %16 = tpu.matmul %14, %15, %cst_14 {dimension_numbers = #tpu.dot_dimension_numbers<[1], [0], [0], [1], [0, 0, 1, 1], [], []>} : vector<16x128xf32>, vector<128x128xf32>, vector<16x128xf32> -> vector<16x128xf32>
    %c0_15 = arith.constant 0 : index
    %c0_16 = arith.constant 0 : index
    %17 = vector.load %arg7[%c0_15, %c0_16] : memref<1x128xf32, #tpu.memory_space<vmem>>, vector<1x128xf32>
    %18 = vector.broadcast %17 : vector<1x128xf32> to vector<16x128xf32>
    %19 = arith.addf %16, %18 : vector<16x128xf32>
    %c0_17 = arith.constant 0 : index
    %c0_18 = arith.constant 0 : index
    %20 = vector.load %arg8[%c0_17, %c0_18] : memref<16x128xf32, #tpu.memory_space<vmem>>, vector<16x128xf32>
    tpu.vector_store %arg8[%c0_17, %c0_18], %19 {strides = array<i32>} : memref<16x128xf32, #tpu.memory_space<vmem>>, vector<16x128xf32>,
    return
  }
  func.func @transform_0(%arg0: i32) -> (i32, i32) {
    %c0_i32 = arith.constant 0 : i32
    %c0_i32_0 = arith.constant 0 : i32
    return %arg0, %c0_i32 : i32, i32
  }
  func.func @transform_1(%arg0: i32) -> (i32, i32) {
    %c0_i32 = arith.constant 0 : i32
    %c0_i32_0 = arith.constant 0 : i32
    %c0_i32_1 = arith.constant 0 : i32
    return %c0_i32, %c0_i32_0 : i32, i32
  }
  func.func @transform_2(%arg0: i32) -> (i32, i32) {
    %c0_i32 = arith.constant 0 : i32
    %c0_i32_0 = arith.constant 0 : i32
    %c0_i32_1 = arith.constant 0 : i32
    return %c0_i32, %c0_i32_0 : i32, i32
  }
  func.func @transform_3(%arg0: i32) -> (i32, i32) {
    %c0_i32 = arith.constant 0 : i32
    %c0_i32_0 = arith.constant 0 : i32
    %c0_i32_1 = arith.constant 0 : i32
    return %c0_i32, %c0_i32_0 : i32, i32
  }
  func.func @transform_4(%arg0: i32) -> (i32, i32) {
    %c0_i32 = arith.constant 0 : i32
    %c0_i32_0 = arith.constant 0 : i32
    %c0_i32_1 = arith.constant 0 : i32
    return %c0_i32, %c0_i32_0 : i32, i32
  }
  func.func @transform_5(%arg0: i32) -> (i32, i32) {
    %c0_i32 = arith.constant 0 : i32
    %c0_i32_0 = arith.constant 0 : i32
    %c0_i32_1 = arith.constant 0 : i32
    return %c0_i32, %c0_i32_0 : i32, i32
  }
  func.func @transform_6(%arg0: i32) -> (i32, i32) {
    %c0_i32 = arith.constant 0 : i32
    %c0_i32_0 = arith.constant 0 : i32
    %c0_i32_1 = arith.constant 0 : i32
    return %c0_i32, %c0_i32_0 : i32, i32
  }
  func.func @transform_7(%arg0: i32) -> (i32, i32) {
    %c0_i32 = arith.constant 0 : i32
    %c0_i32_0 = arith.constant 0 : i32
    return %arg0, %c0_i32 : i32, i32
  }
}

</mosaic_0001>

<bundles_post_ra>
// kernel: item_tower_v2_forward.1
= control target key start
LH: loop header
LB: loop body
LE: loop exit
PB: predicated region body
PF: predicated region fallthrough
CT: control target
= control target key end

     0   :  { %12 = vsyncpa [#allocation3], 0  ;;  %s689_s0 = inlined_call_operand.vmem [shape: f32[16,32], index: 0, kind: input, shape index: {}]   ;;  %s690_s1 = inlined_call_operand.hbm [shape: f32[32,256], index: 1, kind: input, shape index: {}]   ;;  %s691_s2 = inlined_call_operand.vmem [shape: f32[1,256], index: 2, kind: input, shape index: {}]   ;;  %s692_s3 = inlined_call_operand.hbm [shape: f32[256,128], index: 3, kind: input, shape index: {}]   ;;  %s693_s4 = inlined_call_operand.vmem [shape: f32[1,128], index: 4, kind: input, shape index: {}]   ;;  %s694_s5 = inlined_call_operand.hbm [shape: f32[128,128], index: 5, kind: input, shape index: {}]   ;;  %s695_s6 = inlined_call_operand.vmem [shape: f32[1,128], index: 6, kind: input, shape index: {}]   ;;  %s696_s7 = inlined_call_operand.hbm [shape: f32[16,128], index: 7, kind: output, shape index: {}]  }
   0x1   :  { %13 = vsyncpa [#allocation6], 0 }
   0x2   :  { %14 = vsyncpa [#allocation4], 0  ;;  %s602_s24 = smov [#allocation5]  }
   0x3   :  { %s36_s25 = sshll.u32 %s602_s24, 4  ;;  %s37_s25 = int_to_ptr.vmem [resolvable:$true] %s36_s25 }
   0x4   :  { %s524_s26 = scalar_lea.vmem %s37_s25, 4096  ;;  %p529_p1 = scmp.lt.s32.totalorder %s37_s25, %s37_s25 }
   0x5   :  { %p525_p0 = scmp.ne.s32.totalorder %s37_s25, %s524_s26  ;;  %p530_p2 = scmp.lt.s32.totalorder %s524_s26, %s524_s26 }
   0x7   :  { %p531_p3 = por %p530_p2, %p529_p1 }
   0x9   :  { %p532_p4 = pnand %p531_p3, %p525_p0 }
   0xb   :  { %535 = shalt.err (!%p532_p4)
}
   0xc   :  { %s603_s27 = smov 128   ;;  %s604_s28 = smov 8  }
   0xd   :  { %42 = dma.hbm_to_vmem [thread:$0]  %s692_s3, 4096, %s37_s25, [#allocation6], %s603_s27, %s603_s27, %s604_s28  }
   0xe   :  { %s605_s8 = smov [#allocation2]  }
   0xf   :  { %s22_s9 = sshll.u32 %s605_s8, 4  ;;  %s23_s9 = int_to_ptr.vmem [resolvable:$true] %s22_s9 }
  0x10   :  { %s544_s10 = scalar_lea.vmem %s23_s9, 1024  ;;  %p549_p6 = scmp.lt.s32.totalorder %s23_s9, %s23_s9 }
  0x11   :  { %p545_p5 = scmp.ne.s32.totalorder %s23_s9, %s544_s10  ;;  %p550_p7 = scmp.lt.s32.totalorder %s544_s10, %s544_s10 }
  0x13   :  { %p551_p8 = por %p550_p7, %p549_p6 }
  0x15   :  { %p552_p9 = pnand %p551_p8, %p545_p5 }
  0x17   :  { %555 = shalt.err (!%p552_p9)
}
  0x18   :  { %s606_s11 = smov 256   ;;  %s607_s12 = smov 16  }
  0x19   :  { %28 = dma.hbm_to_vmem [thread:$0]  %s690_s1, 1024, %s23_s9, [#allocation3], %s606_s11, %s606_s11, %s607_s12  }
  0x1a   :  { %s608_s15 = smov [#allocation7]  }
  0x1b   :  { %s50_s16 = sshll.u32 %s608_s15, 4  ;;  %s51_s16 = int_to_ptr.vmem [resolvable:$true] %s50_s16 }
  0x1c   :  { %s564_s3 = scalar_lea.vmem %s51_s16, 2048  ;;  %p569_p11 = scmp.lt.s32.totalorder %s51_s16, %s51_s16 }
  0x1d   :  { %p565_p10 = scmp.ne.s32.totalorder %s51_s16, %s564_s3  ;;  %p570_p12 = scmp.lt.s32.totalorder %s564_s3, %s564_s3 }
  0x1f   :  { %p571_p13 = por %p570_p12, %p569_p11 }
  0x21   :  { %p572_p0 = pnand %p571_p13, %p565_p10 }
  0x23   :  { %575 = shalt.err (!%p572_p0)
}
  0x24   :  { %56 = dma.hbm_to_vmem [thread:$0]  %s694_s5, 2048, %s51_s16, [#allocation6], %s603_s27, %s603_s27, %s604_s28  }
  0x25   :  { %596 = dma.done.wait [#allocation3], 1024  }
  0x26   :  { %597 = vsyncadd [#allocation3], 4294966272 }
  0x27   :  { %598 = dma.done.wait [#allocation6], 6144  }
  0x28   :  { %599 = vsyncadd [#allocation6], 4294961152  ;;  %v609_v0 = vmov 0.0   ;;  %v77_v1 = vld [vmem:[#allocation2 + $0x38] sm:$0xff]  ;;  %v76_v2 = vld [vmem:[#allocation2 + $0x30] sm:$0xff]  ;;  %vm90_vm0 = vcmask 261120   ;;  %v80_v53 = vlaneseq }
  0x29   :  { %161 = vmatprep.mubr.f32.mxu0 %v609_v0  ;;  %v75_v3 = vld [vmem:[#allocation2 + $0x28] sm:$0xff]  ;;  %121 = vmatprep.subr.mxu0 %v77_v1  ;;  %v74_v4 = vld [vmem:[#allocation2 + $0x20] sm:$0xff]  ;;  %v73_v5 = vld [vmem:[#allocation2 + $0x18] sm:$0xff]  ;;  %s610_s25 = smov [#allocation8]  }
  0x2a   :  { %122 = vmatpush1.msra.mxu0 %v76_v2  ;;  %v72_v6 = vld [vmem:[#allocation2 + $0x10] sm:$0xff]  ;;  %v209_v7 = vld [vmem:[#allocation5 + $0xf8] sm:$0xff]  ;;  %v71_v9 = vld [vmem:[#allocation2 + $0x8] sm:$0xff]  ;;  %v81_v54 = vshrl.u32 %v80_v53, 7  ;;  %s399_s26 = sshll.u32 %s610_s25, 4  ;;  %s400_s26 = int_to_ptr.vmem [resolvable:$true] %s399_s26 }
  0x2b   :  { %123 = vmatprep.subr.mxu0 %v75_v3  ;;  %v193_v8 = vld [vmem:[#allocation5 + $0x78] sm:$0xff]  ;;  %416 = vmatprep.subr.mxu1 %v209_v7  ;;  %v208_v10 = vld [vmem:[#allocation5 + $0xf0] sm:$0xff]  ;;  %v70_v12 = vld [vmem:[#allocation2] sm:$0xff]  ;;  %p581_p2 = scmp.lt.s32.totalorder %s400_s26, %s400_s26 }
  0x2c   :  { %124 = vmatpush1.msra.mxu0 %v74_v4  ;;  %v192_v11 = vld [vmem:[#allocation5 + $0x70] sm:$0xff]  ;;  %417 = vmatpush3.msra.mxu1 %v193_v8  ;;  %v207_v13 = vld [vmem:[#allocation5 + $0xe8] sm:$0xff]  ;;  %v68_v14 = vld [vmem:[%s689_s0] sm:$0xff]  ;;  %v82_v55 = vsub.s32 0, %v81_v54  ;;  %v86_v57 = vsub.s32 1, %v81_v54 }
  0x2d   :  { %125 = vmatprep.subr.mxu0 %v73_v5  ;;  %418 = vmatprep.subr.mxu1 %v208_v10  ;;  %v191_v15 = vld [vmem:[#allocation5 + $0x68] sm:$0xff]  ;;  %v206_v16 = vld [vmem:[#allocation5 + $0xe0] sm:$0xff]  ;;  %v205_v18 = vld [vmem:[#allocation5 + $0xd8] sm:$0xff] }
  0x2e   :  { %126 = vmatpush1.msra.mxu0 %v72_v6  ;;  %419 = vmatpush3.msra.mxu1 %v192_v11  ;;  %v190_v17 = vld [vmem:[#allocation5 + $0x60] sm:$0xff]  ;;  %v69_v19 = vld [vmem:[%s689_s0 + $0x8] sm:$0xff]  ;;  %v189_v20 = vld [vmem:[#allocation5 + $0x58] sm:$0xff] }
  0x2f   :  { %127 = vmatprep.subr.mxu0 %v71_v9  ;;  %420 = vmatprep.subr.mxu1 %v207_v13  ;;  %v204_v21 = vld [vmem:[#allocation5 + $0xd0] sm:$0xff]  ;;  %v203_v23 = vld [vmem:[#allocation5 + $0xc8] sm:$0xff]  ;;  %v202_v25 = vld [vmem:[#allocation5 + $0xc0] sm:$0xff] }
  0x30   :  { %128 = vmatpush1.msra.mxu0 %v70_v12  ;;  %421 = vmatpush3.msra.mxu1 %v191_v15  ;;  %v188_v22 = vld [vmem:[#allocation5 + $0x50] sm:$0xff]  ;;  %v187_v24 = vld [vmem:[#allocation5 + $0x48] sm:$0xff]  ;;  %v186_v26 = vld [vmem:[#allocation5 + $0x40] sm:$0xff] }
  0x31   :  { %412 = vmatmul.mubr.msk.f32.vlgmr.msra.gmra.mxu0 %vm90_vm0, %v68_v14  ;;  %422 = vmatprep.subr.mxu1 %v206_v16  ;;  %v201_v27 = vld [vmem:[#allocation5 + $0xb8] sm:$0xff]  ;;  %v200_v29 = vld [vmem:[#allocation5 + $0xb0] sm:$0xff]  ;;  %v199_v31 = vld [vmem:[#allocation5 + $0xa8] sm:$0xff] }
  0x32   :  { %167 = vmatprep.mubr.f32.mxu0 %v609_v0  ;;  %423 = vmatpush3.msra.mxu1 %v190_v17  ;;  %v185_v28 = vld [vmem:[#allocation5 + $0x38] sm:$0xff]  ;;  %v184_v30 = vld [vmem:[#allocation5 + $0x30] sm:$0xff]  ;;  %v183_v32 = vld [vmem:[#allocation5 + $0x28] sm:$0xff] }
  0x33   :  { %424 = vmatprep.subr.mxu1 %v205_v18  ;;  %v198_v33 = vld [vmem:[#allocation5 + $0xa0] sm:$0xff]  ;;  %v197_v35 = vld [vmem:[#allocation5 + $0x98] sm:$0xff]  ;;  %v196_v37 = vld [vmem:[#allocation5 + $0x90] sm:$0xff] }
  0x34   :  { %425 = vmatpush3.msra.mxu1 %v189_v20  ;;  %v182_v34 = vld [vmem:[#allocation5 + $0x20] sm:$0xff]  ;;  %v181_v36 = vld [vmem:[#allocation5 + $0x18] sm:$0xff]  ;;  %v180_v38 = vld [vmem:[#allocation5 + $0x10] sm:$0xff] }
  0x35   :  { %413 = vmatmul.mubr.msk.f32.gmra.mxu0 %vm90_vm0, %v69_v19  ;;  %426 = vmatprep.subr.mxu1 %v204_v21  ;;  %v195_v39 = vld [vmem:[#allocation5 + $0x88] sm:$0xff]  ;;  %v194_v41 = vld [vmem:[#allocation5 + $0x80] sm:$0xff]  ;;  %v309_v43 = vld [vmem:[#allocation7 + $0x78] sm:$0xff] }
  0x36   :  { %427 = vmatpush3.msra.mxu1 %v188_v22  ;;  %v179_v40 = vld [vmem:[#allocation5 + $0x8] sm:$0xff]  ;;  %v178_v42 = vld [vmem:[#allocation5] sm:$0xff]  ;;  %v308_v44 = vld [vmem:[#allocation7 + $0x70] sm:$0xff]  ;;  %472 = vmatprep.subr.mxu0 %v309_v43 }
  0x37   :  { %428 = vmatprep.subr.mxu1 %v203_v23  ;;  %473 = vmatpush3.msra.mxu0 %v309_v43  ;;  %v307_v45 = vld [vmem:[#allocation7 + $0x68] sm:$0xff]  ;;  %v306_v46 = vld [vmem:[#allocation7 + $0x60] sm:$0xff]  ;;  %v305_v47 = vld [vmem:[#allocation7 + $0x58] sm:$0xff] }
  0x38   :  { %429 = vmatpush3.msra.mxu1 %v187_v24  ;;  %474 = vmatprep.subr.mxu0 %v308_v44  ;;  %v304_v48 = vld [vmem:[#allocation7 + $0x50] sm:$0xff]  ;;  %v303_v49 = vld [vmem:[#allocation7 + $0x48] sm:$0xff]  ;;  %v302_v50 = vld [vmem:[#allocation7 + $0x40] sm:$0xff] }
  0x39   :  { %430 = vmatprep.subr.mxu1 %v202_v25  ;;  %475 = vmatpush3.msra.mxu0 %v308_v44  ;;  %v301_v51 = vld [vmem:[#allocation7 + $0x38] sm:$0xff]  ;;  %v300_v52 = vld [vmem:[#allocation7 + $0x30] sm:$0xff]  ;;  %v78_v56 = vld [vmem:[%s691_s2] sm:$0x3] }
  0x3a   :  { %431 = vmatpush3.msra.mxu1 %v186_v26  ;;  %476 = vmatprep.subr.mxu0 %v307_v45  ;;  %v83_v58 = vrot.slane %v78_v56, %v82_v55  ;;  %v87_v59 = vrot.slane %v78_v56, %v86_v57  ;;  %v299_v8 = vld [vmem:[#allocation7 + $0x28] sm:$0xff]  ;;  %v298_v9 = vld [vmem:[#allocation7 + $0x20] sm:$0xff]  ;;  %v297_v10 = vld [vmem:[#allocation7 + $0x18] sm:$0xff] }
  0x3b   :  { %432 = vmatprep.subr.mxu1 %v201_v27  ;;  %477 = vmatpush3.msra.mxu0 %v307_v45  ;;  %v296_v11 = vld [vmem:[#allocation7 + $0x10] sm:$0xff]  ;;  %v295_v12 = vld [vmem:[#allocation7 + $0x8] sm:$0xff]  ;;  %v294_v13 = vld [vmem:[#allocation7] sm:$0xff] }
  0x3c   :  { %433 = vmatpush3.msra.mxu1 %v185_v28  ;;  %478 = vmatprep.subr.mxu0 %v306_v46  ;;  %v414_v15 = vld [vmem:[%s693_s4] ss:$0 sm:$0xff]  ;;  %s576_s4 = scalar_lea.vmem %s400_s26, 256 }
  0x3d   :  { %434 = vmatprep.subr.mxu1 %v200_v29  ;;  %479 = vmatpush3.msra.mxu0 %v306_v46  ;;  %v415_v25 = vld [vmem:[%s695_s6] ss:$0 sm:$0xff]  ;;  %p577_p1 = scmp.ne.s32.totalorder %s400_s26, %s576_s4  ;;  %p582_p3 = scmp.lt.s32.totalorder %s576_s4, %s576_s4 }
  0x3e   :  { %435 = vmatpush3.msra.mxu1 %v184_v30  ;;  %480 = vmatprep.subr.mxu0 %v305_v47 }
  0x3f   :  { %436 = vmatprep.subr.mxu1 %v199_v31  ;;  %481 = vmatpush3.msra.mxu0 %v305_v47  ;;  %p583_p4 = por %p582_p3, %p581_p2 }
  0x40   :  { %437 = vmatpush3.msra.mxu1 %v183_v32  ;;  %482 = vmatprep.subr.mxu0 %v304_v48 }
  0x41   :  { %438 = vmatprep.subr.mxu1 %v198_v33  ;;  %483 = vmatpush3.msra.mxu0 %v304_v48  ;;  %p584_p5 = pnand %p583_p4, %p577_p1 }
  0x42   :  { %439 = vmatpush3.msra.mxu1 %v182_v34  ;;  %484 = vmatprep.subr.mxu0 %v303_v49 }
  0x43   :  { %440 = vmatprep.subr.mxu1 %v197_v35  ;;  %485 = vmatpush3.msra.mxu0 %v303_v49 }
  0x44   :  { %441 = vmatpush3.msra.mxu1 %v181_v36  ;;  %486 = vmatprep.subr.mxu0 %v302_v50 }
  0x45   :  { %442 = vmatprep.subr.mxu1 %v196_v37  ;;  %487 = vmatpush3.msra.mxu0 %v302_v50 }
  0x46   :  { %443 = vmatpush3.msra.mxu1 %v180_v38  ;;  %488 = vmatprep.subr.mxu0 %v301_v51 }
  0x47   :  { %444 = vmatprep.subr.mxu1 %v195_v39  ;;  %489 = vmatpush3.msra.mxu0 %v301_v51 }
  0x48   :  { %445 = vmatpush3.msra.mxu1 %v179_v40  ;;  %490 = vmatprep.subr.mxu0 %v300_v52 }
  0x49   :  { %446 = vmatprep.subr.mxu1 %v194_v41  ;;  %491 = vmatpush3.msra.mxu0 %v300_v52 }
  0x4a   :  { %447 = vmatpush3.msra.mxu1 %v178_v42  ;;  %492 = vmatprep.subr.mxu0 %v299_v8 }
  0x4b   :  { %493 = vmatpush3.msra.mxu0 %v299_v8 }
  0x4c   :  { %494 = vmatprep.subr.mxu0 %v298_v9 }
  0x4d   :  { %495 = vmatpush3.msra.mxu0 %v298_v9 }
  0x4e   :  { %496 = vmatprep.subr.mxu0 %v297_v10 }
  0x4f   :  { %497 = vmatpush3.msra.mxu0 %v297_v10 }
  0x50   :  { %498 = vmatprep.subr.mxu0 %v296_v11 }
  0x51   :  { %499 = vmatpush3.msra.mxu0 %v296_v11 }
  0x52   :  { %500 = vmatprep.subr.mxu0 %v295_v12 }
  0x53   :  { %501 = vmatpush3.msra.mxu0 %v295_v12 }
  0x54   :  { %502 = vmatprep.subr.mxu0 %v294_v13 }
  0x55   :  { %503 = vmatpush3.msra.mxu0 %v294_v13 }
  0xf1   :  { %v163_v60 = vpop.f32.mrf.mxu0 }
  0xf2   :  { %v164_v61 = vadd.f32 %v163_v60, %v83_v58 }
  0xf3   :  { %v165_v62 = vpop.f32.mrf.mxu0 }
  0xf4   :  { %v166_v63 = vadd.f32 %v165_v62, %v87_v59  ;;  %v174_v2 = vmax.f32 %v164_v61, 0.0 }
  0xf5   :  { %v169_v0 = vpop.f32.mrf.mxu0 }
  0xf6   :  { %v175_v1 = vmax.f32 %v166_v63, 0.0  ;;  %v170_v3 = vadd.f32 %v169_v0, %v83_v58 }
  0xf7   :  { %v171_v4 = vpop.f32.mrf.mxu0 }
  0xf8   :  { %v172_v5 = vadd.f32 %v171_v4, %v87_v59  ;;  %281 = vmatprep.mubr.f32.mxu1 %v175_v1  ;;  %v176_v7 = vmax.f32 %v170_v3, 0.0 }
  0xf9   :  { %282 = vmatmul.mubr.f32.vlgmr.msra.gmra.mxu1 %v174_v2 }
  0xfa   :  { %v177_v6 = vmax.f32 %v172_v5, 0.0 }
  0xfc   :  { %286 = vmatprep.mubr.f32.mxu1 %v177_v6 }
  0xfd   :  { %287 = vmatmul.mubr.f32.gmra.mxu1 %v176_v7 }
 0x1b9   :  { %v448_v14 = vpop.f32.mrf.mxu1 }
 0x1bb   :  { %v449_v16 = vpop.f32.mrf.mxu1 }
 0x1bc   :  { %v450_v17 = vadd.f32 %v449_v16, %v448_v14 }
 0x1bd   :  { %v451_v18 = vpop.f32.mrf.mxu1 }
 0x1be   :  { %v284_v19 = vadd.f32 %v450_v17, %v414_v15 }
 0x1bf   :  { %v452_v20 = vpop.f32.mrf.mxu1 }
 0x1c0   :  { %v292_v21 = vmax.f32 %v284_v19, 0.0  ;;  %v453_v22 = vadd.f32 %v452_v20, %v451_v18 }
 0x1c2   :  { %v289_v23 = vadd.f32 %v453_v22, %v414_v15  ;;  %504 = vmatprep.mubr.f32.mxu0 %v292_v21 }
 0x1c4   :  { %v293_v24 = vmax.f32 %v289_v23, 0.0 }
 0x1c6   :  { %505 = vmatmul.mubr.f32.vlgmr.msra.gmra.mxu0 %v293_v24 }
 0x286   :  { %v506_v26 = vpop.f32.mrf.mxu0 }
 0x287   :  { %v389_v27 = vadd.f32 %v506_v26, %v415_v25 }
 0x288   :  { %v383_v28 = vpop.f32.mrf.mxu0 }
 0x289   :  { %393 = vst [vmem:[#allocation8 + $0x8] sm:$0xff] %v389_v27  ;;  %v384_v29 = vadd.f32 %v415_v25, %v383_v28 }
 0x28b   :  { %392 = vst [vmem:[#allocation8] sm:$0xff] %v384_v29 }
 0x28c   :  { %587 = shalt.err (!%p584_p5)
}
 0x28d   :  { %405 = dma.vmem_to_hbm [thread:$0]  %s400_s26, 256, %s696_s7, [#allocation4], %s603_s27, %s603_s27, %s604_s28  }
 0x28e   :  { %600 = dma.done.wait [#allocation4], 256  }
 0x28f   :  { %601 = vsyncadd [#allocation4], 4294967040 }
 0x290   :  { %409 = vsyncpa [#allocation3], 1 }
 0x291   :  { %410 = vsyncpa [#allocation6], 1 }
 0x292   :  { %411 = vsyncpa [#allocation4], 1 }

</bundles_post_ra>
